<compile_context>
chip_gen: v7x
topology: tpu7x:2x2x1
jax: 0.10.0
libtpu: 0.0.40
codegen_flags: <defaults>
</compile_context>

<pallas_src>
import math

import jax
import jax.numpy as jnp
from jax import lax
from jax.experimental import pallas as pl
from jax.experimental.pallas import tpu as pltpu


# ---------------------------------------------------------------------------
# Phase 1: recurrence-independent precompute (big-M GEMMs, 'parallel')
# ---------------------------------------------------------------------------

def _precompute_kernel(x_ref, me_ref, wih_ref, wmi_ref, wmh_ref, wmt_ref,
                       b_ref, mb_ref, ig_ref, mt_ref):
    x = x_ref[...]                       # [TM, In]  bf16
    me = me_ref[...]                     # [TM, OH]  f32

    # Input half of the LSTM gates with the bias folded in.
    ig_ref[...] = (jnp.dot(x, wih_ref[...], preferred_element_type=jnp.float32)
                   + b_ref[...])

    # Full memory-gate path (depends only on x and me, never on h/c).
    mg = (jnp.dot(x, wmi_ref[...], preferred_element_type=jnp.float32)
          + jnp.dot(me.astype(jnp.bfloat16), wmh_ref[...],
                    preferred_element_type=jnp.float32)
          + mb_ref[...])
    mt_ref[...] = jnp.dot((jax.nn.sigmoid(mg) * me).astype(jnp.bfloat16),
                          wmt_ref[...], preferred_element_type=jnp.float32)


def precompute_invariant(x_seq_bf16, me_seq, fused, hidden_size):
    """ig_seq = x@W_ih + bias ; mem_term_seq = (sig(x@W_memi + me@W_memh + mb)*me)@W_memt."""
    T, B, In = x_seq_bf16.shape
    OH = me_seq.shape[-1]
    H = int(hidden_size)
    M = T * B

    x2 = x_seq_bf16.reshape(M, In)
    me2 = me_seq.reshape(M, OH)

    # Row chunking: at demo sizes this is a single chunk (M = T*B rows of MXU work).
    if M <= 512:
        TM = M
    else:
        assert M % 512 == 0, "pad T*B to a multiple of 512 for row chunking"
        TM = 512

    flops = 2 * M * (In * 4 * H + In * OH + OH * OH + OH * H)
    cost = pl.CostEstimate(flops=int(flops),
                           transcendentals=int(M * OH),
                           bytes_accessed=int(x2.nbytes + me2.nbytes
                                              + M * (4 * H + H) * 4))

    grid_spec = pltpu.PrefetchScalarGridSpec(
        num_scalar_prefetch=0,
        grid=(M // TM,),
        in_specs=[
            pl.BlockSpec((TM, In), lambda i: (i, 0)),      # x rows
            pl.BlockSpec((TM, OH), lambda i: (i, 0)),      # me rows
            pl.BlockSpec((In, 4 * H), lambda i: (0, 0)),   # W_ih   bf16
            pl.BlockSpec((In, OH), lambda i: (0, 0)),      # W_memi bf16
            pl.BlockSpec((OH, OH), lambda i: (0, 0)),      # W_memh bf16
            pl.BlockSpec((OH, H), lambda i: (0, 0)),       # W_memt bf16
            pl.BlockSpec((1, 4 * H), lambda i: (0, 0)),    # bias     f32
            pl.BlockSpec((1, OH), lambda i: (0, 0)),       # mem_bias f32
        ],
        out_specs=[
            pl.BlockSpec((TM, 4 * H), lambda i: (i, 0)),   # ig rows
            pl.BlockSpec((TM, H), lambda i: (i, 0)),       # mem_term rows
        ],
    )

    ig2, mt2 = pl.pallas_call(
        _precompute_kernel,
        grid_spec=grid_spec,
        out_shape=(jax.ShapeDtypeStruct((M, 4 * H), jnp.float32),
                   jax.ShapeDtypeStruct((M, H), jnp.float32)),
        compiler_params=pltpu.CompilerParams(
            dimension_semantics=("parallel",)),            # v7x: second TC usable here
        cost_estimate=cost,
    )(x2, me2, fused["w_ih"], fused["w_memi"], fused["w_memh"], fused["w_memt"],
      fused["bias"], fused["mem_bias"])

    return ig2.reshape(T, B, 4 * H), mt2.reshape(T, B, H)


# ---------------------------------------------------------------------------
# Phase 2: serial recurrence (Tc timesteps per grid step, unrolled fori_loop)
# ---------------------------------------------------------------------------

def make_recurrent_kernel(hidden_size: int, tc: int, drop_mask: float):
    """drop_mask / H / Tc are baked in as Python scalars (no traced captures)."""
    H = int(hidden_size)
    Tc = int(tc)
    m = float(drop_mask)

    def kernel(ig_ref, mt_ref, h0_ref, c0_ref, whh_ref,
               h_seq_ref, c_seq_ref, h_sc, c_sc, hbf_sc):
        chunk = pl.program_id(0)

        # Initialise the recurrent carry once, at the first chunk.
        @pl.when(chunk == 0)
        def _():
            h_sc[...] = h0_ref[...]
            c_sc[...] = c0_ref[...]
            hbf_sc[...] = h0_ref[...].astype(jnp.bfloat16)

        def step(t, carry):
            h, c, hbf = carry
            # Single K=128 matmul on the serial critical path; ig already holds
            # x@W_ih + bias, mem_term_seq holds the whole memory-gate path.
            gates = (jnp.dot(hbf, whh_ref[...],
                             preferred_element_type=jnp.float32) + ig_ref[t])
            # torch.split(..., hidden_size, dim=1) order: f, i, o, g.
            # H == 128 -> 128-lane aligned slices (free).
            f = gates[:, 0 * H:1 * H]
            i = gates[:, 1 * H:2 * H]
            o = gates[:, 2 * H:3 * H]
            g = gates[:, 3 * H:4 * H]

            c_next = (jax.nn.sigmoid(f) * c
                      + jax.nn.sigmoid(i) * jnp.tanh(g)
                      + mt_ref[t])
            h_next = jax.nn.sigmoid(o) * jnp.tanh(c_next)

            # Eval-mode zoneout blend with the scalar mask m = 1 - dropmask.
            h_new = h_next * m + h * (1.0 - m)
            c_new = c_next * m + c * (1.0 - m)

            h_seq_ref[t] = h_new
            c_seq_ref[t] = c_new
            return (h_new, c_new, h_new.astype(jnp.bfloat16))

        h, c, hbf = lax.fori_loop(0, Tc, step,
                                  (h_sc[...], c_sc[...], hbf_sc[...]),
                                  unroll=True)

        # Chunk-to-chunk carry.
        h_sc[...] = h
        c_sc[...] = c
        hbf_sc[...] = hbf

    return kernel


def _pick_tc(T: int, cap: int = 16) -> int:
    tc = min(T, cap)
    while T % tc != 0:
        tc -= 1
    return tc


def lstm_cell_forward_seq(x_seq, me_seq, h0, c0, fused,
                          hidden_size: int, dropmask: float = 0.2,
                          tc_cap: int = 16):
    """Run T recurrent steps: parallel precompute phase + chunked serial recurrence."""
    T, B, In = x_seq.shape
    OH = me_seq.shape[-1]
    H = int(hidden_size)
    drop_mask = 1.0 - float(dropmask)      # eval-mode self._dropout_mask (scalar)

    # x only feeds matmuls -> cast once on the host (halves its DMA bytes).
    x_bf16 = x_seq.astype(jnp.bfloat16)

    # ---- Phase 1: hoisted, recurrence-independent GEMMs at M = T*B -----------
    ig_seq, mem_term_seq = precompute_invariant(x_bf16, me_seq, fused, H)

    # ---- Phase 2: serial recurrence ------------------------------------------
    Tc = _pick_tc(T, tc_cap)
    kernel = make_recurrent_kernel(H, Tc, drop_mask)

    flops = T * 2 * B * H * 4 * H
    transcendentals = T * B * 5 * H
    bytes_accessed = (int(fused["w_hh"].size) * fused["w_hh"].dtype.itemsize
                      + ig_seq.nbytes + mem_term_seq.nbytes
                      + h0.nbytes + c0.nbytes + 2 * T * B * H * 4)
    cost = pl.CostEstimate(flops=int(flops),
                           transcendentals=int(transcendentals),
                           bytes_accessed=int(bytes_accessed))

    grid_spec = pltpu.PrefetchScalarGridSpec(
        num_scalar_prefetch=0,
        grid=(T // Tc,),
        in_specs=[
            pl.BlockSpec((Tc, B, 4 * H), lambda i: (i, 0, 0)),   # ig_seq chunk
            pl.BlockSpec((Tc, B, H), lambda i: (i, 0, 0)),       # mem_term chunk
            pl.BlockSpec((B, H), lambda i: (0, 0)),              # h0 (const)
            pl.BlockSpec((B, H), lambda i: (0, 0)),              # c0 (const)
            pl.BlockSpec((H, 4 * H), lambda i: (0, 0)),          # W_hh bf16 (resident)
        ],
        out_specs=[
            pl.BlockSpec((Tc, B, H), lambda i: (i, 0, 0)),       # h per chunk
            pl.BlockSpec((Tc, B, H), lambda i: (i, 0, 0)),       # c per chunk
        ],
        scratch_shapes=[
            pltpu.VMEM((B, H), jnp.float32),                     # h carry (f32)
            pltpu.VMEM((B, H), jnp.float32),                     # c carry (f32)
            pltpu.VMEM((B, H), jnp.bfloat16),                    # h carry (bf16 shadow)
        ],
    )

    h_seq, c_seq = pl.pallas_call(
        kernel,
        grid_spec=grid_spec,
        out_shape=(jax.ShapeDtypeStruct((T, B, H), jnp.float32),
                   jax.ShapeDtypeStruct((T, B, H), jnp.float32)),
        compiler_params=pltpu.CompilerParams(
            dimension_semantics=("arbitrary",)),                 # sequential recurrence
        cost_estimate=cost,
    )(ig_seq, mem_term_seq, h0, c0, fused["w_hh"])
    return h_seq, c_seq


# ---------------------------------------------------------------------------
# Plain-JAX reference (same bf16-weight / f32-accumulate numerics as the kernel;
# the math is identical to the f32 PyTorch expression).
# ---------------------------------------------------------------------------

def reference_forward(x_seq, me_seq, h0, c0, fused,
                      hidden_size: int, dropmask: float = 0.2):
    H = hidden_size
    m = 1.0 - dropmask
    h, c = h0, c0
    hs, cs = [], []
    xb = x_seq.astype(jnp.bfloat16)
    for t in range(x_seq.shape[0]):
        x, me = xb[t], me_seq[t]
        ig = jnp.dot(x, fused["w_ih"],
                     preferred_element_type=jnp.float32) + fused["bias"]
        gates = jnp.dot(h.astype(jnp.bfloat16), fused["w_hh"],
                        preferred_element_type=jnp.float32) + ig
        f, i, o, g = (gates[:, :H], gates[:, H:2 * H],
                      gates[:, 2 * H:3 * H], gates[:, 3 * H:4 * H])
        mg = (jnp.dot(x, fused["w_memi"], preferred_element_type=jnp.float32)
              + jnp.dot(me.astype(jnp.bfloat16), fused["w_memh"],
                        preferred_element_type=jnp.float32)
              + fused["mem_bias"])
        mem_term = jnp.dot((jax.nn.sigmoid(mg) * me).astype(jnp.bfloat16),
                           fused["w_memt"], preferred_element_type=jnp.float32)
        c_next = jax.nn.sigmoid(f) * c + jax.nn.sigmoid(i) * jnp.tanh(g) + mem_term
        h_next = jax.nn.sigmoid(o) * jnp.tanh(c_next)
        h = h_next * m + h * (1.0 - m)
        c = c_next * m + c * (1.0 - m)
        hs.append(h)
        cs.append(c)
    return jnp.stack(hs), jnp.stack(cs)


# ---------------------------------------------------------------------------
# Parameter init (reset_parameters) and host-side weight prep
# ---------------------------------------------------------------------------

def init_params(key, input_size, hidden_size, order=1):
    """reset_parameters(): every weight ~ U(-stdv, stdv), stdv = 1/sqrt(hidden_size)."""
    stdv = 1.0 / math.sqrt(hidden_size)
    ks = jax.random.split(key, 7)
    u = lambda k, shape: jax.random.uniform(k, shape, jnp.float32, -stdv, stdv)
    OH = order * hidden_size
    return {
        "weight_ih":   u(ks[0], (input_size, 4 * hidden_size)),
        "weight_hh":   u(ks[1], (hidden_size, 4 * hidden_size)),
        "bias":        u(ks[2], (1, 4 * hidden_size)),   # kept 2-D for TPU
        "weight_memh": u(ks[3], (OH, OH)),
        "weight_memt": u(ks[4], (OH, hidden_size)),
        "weight_memi": u(ks[5], (input_size, OH)),
        "mem_bias":    u(ks[6], (1, OH)),                # kept 2-D for TPU
    }


def fuse_params(params):
    """Host-side prep: W_ih / W_hh kept separate (W_ih lives only in the parallel
    precompute phase), all matmul weights cast to bf16 once, biases stay f32."""
    return {
        "w_ih":    params["weight_ih"].astype(jnp.bfloat16),    # [In, 4H]
        "w_hh":    params["weight_hh"].astype(jnp.bfloat16),    # [H, 4H]
        "w_memi":  params["weight_memi"].astype(jnp.bfloat16),  # [In, OH]
        "w_memh":  params["weight_memh"].astype(jnp.bfloat16),  # [OH, OH]
        "w_memt":  params["weight_memt"].astype(jnp.bfloat16),  # [OH, H]
        "bias":    params["bias"],                              # f32 [1, 4H]
        "mem_bias": params["mem_bias"],                         # f32 [1, OH]
    }


if __name__ == "__main__":
    T = 8
    B = 8
    input_size = 128
    hidden_size = 128   # head_size = 32; H % 4 == 0; gate slices 128-lane aligned
    order = 1
    dropmask = 0.2

    key = jax.random.PRNGKey(0)
    kp, kx, kh, kc, km = jax.random.split(key, 5)

    params = init_params(kp, input_size, hidden_size, order)
    fused = fuse_params(params)

    x_seq = jax.random.normal(kx, (T, B, input_size), jnp.float32)
    me_seq = jax.random.normal(km, (T, B, order * hidden_size), jnp.float32)
    h0 = jax.random.normal(kh, (B, hidden_size), jnp.float32)
    c0 = jax.random.normal(kc, (B, hidden_size), jnp.float32)

    h_seq, c_seq = lstm_cell_forward_seq(x_seq, me_seq, h0, c0, fused,
                                         hidden_size, dropmask)
    jax.block_until_ready((h_seq, c_seq))

    h_ref, c_ref = reference_forward(x_seq, me_seq, h0, c0, fused,
                                     hidden_size, dropmask)

    assert jnp.allclose(h_seq, h_ref, atol=2e-3, rtol=2e-3), \
        f"h mismatch, max abs err {jnp.max(jnp.abs(h_seq - h_ref))}"
    assert jnp.allclose(c_seq, c_ref, atol=2e-3, rtol=2e-3), \
        f"c mismatch, max abs err {jnp.max(jnp.abs(c_seq - c_ref))}"

    print("KERNEL_OK")
</pallas_src>

<mosaic_0001>
module attributes {stable_mosaic.version = 11 : i64} {
  func.func @_precompute_kernel(%arg0: i32, %arg1: memref<64x128xbf16, #tpu.memory_space<vmem>>, %arg2: memref<64x128xf32, #tpu.memory_space<vmem>>, %arg3: memref<128x512xbf16, #tpu.memory_space<vmem>>, %arg4: memref<128x128xbf16, #tpu.memory_space<vmem>>, %arg5: memref<128x128xbf16, #tpu.memory_space<vmem>>, %arg6: memref<128x128xbf16, #tpu.memory_space<vmem>>, %arg7: memref<1x512xf32, #tpu.memory_space<vmem>>, %arg8: memref<1x128xf32, #tpu.memory_space<vmem>>, %arg9: memref<64x512xf32, #tpu.memory_space<vmem>>, %arg10: memref<64x128xf32, #tpu.memory_space<vmem>>) attributes {dimension_semantics = [#tpu.dimension_semantics<parallel>], iteration_bounds = array<i64: 1>, scalar_prefetch = 0 : i64, scratch_operands = 0 : i64, tpu.core_type = #tpu.core_type<tc>, window_params = [{transform_indices = @transform_0, window_bounds = array<i64: 64, 128>}, {transform_indices = @transform_1, window_bounds = array<i64: 64, 128>}, {pipeline_mode = #tpu.pipeline_mode<synchronous>, transform_indices = @transform_2, window_bounds = array<i64: 128, 512>}, {pipeline_mode = #tpu.pipeline_mode<synchronous>, transform_indices = @transform_3, window_bounds = array<i64: 128, 128>}, {pipeline_mode = #tpu.pipeline_mode<synchronous>, transform_indices = @transform_4, window_bounds = array<i64: 128, 128>}, {pipeline_mode = #tpu.pipeline_mode<synchronous>, transform_indices = @transform_5, window_bounds = array<i64: 128, 128>}, {pipeline_mode = #tpu.pipeline_mode<synchronous>, transform_indices = @transform_6, window_bounds = array<i64: 1, 512>}, {pipeline_mode = #tpu.pipeline_mode<synchronous>, transform_indices = @transform_7, window_bounds = array<i64: 1, 128>}, {transform_indices = @transform_8, window_bounds = array<i64: 64, 512>}, {transform_indices = @transform_9, window_bounds = array<i64: 64, 128>}]} {
    %c0 = arith.constant 0 : index
    %c0_0 = arith.constant 0 : index
    %0 = vector.load %arg1[%c0, %c0_0] : memref<64x128xbf16, #tpu.memory_space<vmem>>, vector<64x128xbf16>
    %c0_1 = arith.constant 0 : index
    %c0_2 = arith.constant 0 : index
    %1 = vector.load %arg2[%c0_1, %c0_2] : memref<64x128xf32, #tpu.memory_space<vmem>>, vector<64x128xf32>
    %c0_3 = arith.constant 0 : index
    %c0_4 = arith.constant 0 : index
    %2 = vector.load %arg3[%c0_3, %c0_4] : memref<128x512xbf16, #tpu.memory_space<vmem>>, vector<128x512xbf16>
    %cst = arith.constant dense<0.000000e+00> : vector<64x512xf32>
    %3 = tpu.matmul %0, %2, %cst {dimension_numbers = #tpu.dot_dimension_numbers<[1], [0], [0], [1], [0, 0, 1, 1], [], []>} : vector<64x128xbf16>, vector<128x512xbf16>, vector<64x512xf32> -> vector<64x512xf32>
    %c0_5 = arith.constant 0 : index
    %c0_6 = arith.constant 0 : index
    %4 = vector.load %arg7[%c0_5, %c0_6] : memref<1x512xf32, #tpu.memory_space<vmem>>, vector<1x512xf32>
    %5 = vector.broadcast %4 : vector<1x512xf32> to vector<64x512xf32>
    %6 = arith.addf %3, %5 : vector<64x512xf32>
    %c0_7 = arith.constant 0 : index
    %c0_8 = arith.constant 0 : index
    %7 = vector.load %arg9[%c0_7, %c0_8] : memref<64x512xf32, #tpu.memory_space<vmem>>, vector<64x512xf32>
    tpu.vector_store %arg9[%c0_7, %c0_8], %6 {strides = array<i32>} : memref<64x512xf32, #tpu.memory_space<vmem>>, vector<64x512xf32>,
    %c0_9 = arith.constant 0 : index
    %c0_10 = arith.constant 0 : index
    %8 = vector.load %arg4[%c0_9, %c0_10] : memref<128x128xbf16, #tpu.memory_space<vmem>>, vector<128x128xbf16>
    %cst_11 = arith.constant dense<0.000000e+00> : vector<64x128xf32>
    %9 = tpu.matmul %0, %8, %cst_11 {dimension_numbers = #tpu.dot_dimension_numbers<[1], [0], [0], [1], [0, 0, 1, 1], [], []>} : vector<64x128xbf16>, vector<128x128xbf16>, vector<64x128xf32> -> vector<64x128xf32>
    %10 = arith.truncf %1 : vector<64x128xf32> to vector<64x128xbf16>
    %c0_12 = arith.constant 0 : index
    %c0_13 = arith.constant 0 : index
    %11 = vector.load %arg5[%c0_12, %c0_13] : memref<128x128xbf16, #tpu.memory_space<vmem>>, vector<128x128xbf16>
    %cst_14 = arith.constant dense<0.000000e+00> : vector<64x128xf32>
    %12 = tpu.matmul %10, %11, %cst_14 {dimension_numbers = #tpu.dot_dimension_numbers<[1], [0], [0], [1], [0, 0, 1, 1], [], []>} : vector<64x128xbf16>, vector<128x128xbf16>, vector<64x128xf32> -> vector<64x128xf32>
    %13 = arith.addf %9, %12 : vector<64x128xf32>
    %c0_15 = arith.constant 0 : index
    %c0_16 = arith.constant 0 : index
    %14 = vector.load %arg8[%c0_15, %c0_16] : memref<1x128xf32, #tpu.memory_space<vmem>>, vector<1x128xf32>
    %15 = vector.broadcast %14 : vector<1x128xf32> to vector<64x128xf32>
    %16 = arith.addf %13, %15 : vector<64x128xf32>
    %17 = arith.negf %16 : vector<64x128xf32>
    %18 = math.exp %17 : vector<64x128xf32>
    %cst_17 = arith.constant 1.000000e+00 : f32
    %19 = vector.broadcast %cst_17 : f32 to vector<64x128xf32>
    %20 = arith.addf %19, %18 : vector<64x128xf32>
    %21 = arith.divf %19, %20 : vector<64x128xf32>
    %22 = arith.mulf %21, %1 : vector<64x128xf32>
    %23 = arith.truncf %22 : vector<64x128xf32> to vector<64x128xbf16>
    %c0_18 = arith.constant 0 : index
    %c0_19 = arith.constant 0 : index
    %24 = vector.load %arg6[%c0_18, %c0_19] : memref<128x128xbf16, #tpu.memory_space<vmem>>, vector<128x128xbf16>
    %cst_20 = arith.constant dense<0.000000e+00> : vector<64x128xf32>
    %25 = tpu.matmul %23, %24, %cst_20 {dimension_numbers = #tpu.dot_dimension_numbers<[1], [0], [0], [1], [0, 0, 1, 1], [], []>} : vector<64x128xbf16>, vector<128x128xbf16>, vector<64x128xf32> -> vector<64x128xf32>
    %c0_21 = arith.constant 0 : index
    %c0_22 = arith.constant 0 : index
    %26 = vector.load %arg10[%c0_21, %c0_22] : memref<64x128xf32, #tpu.memory_space<vmem>>, vector<64x128xf32>
    tpu.vector_store %arg10[%c0_21, %c0_22], %25 {strides = array<i32>} : memref<64x128xf32, #tpu.memory_space<vmem>>, vector<64x128xf32>,
    return
  }
  func.func @transform_0(%arg0: i32) -> (i32, i32) {
    %c0_i32 = arith.constant 0 : i32
    %c0_i32_0 = arith.constant 0 : i32
    return %arg0, %c0_i32 : i32, i32
  }
  func.func @transform_1(%arg0: i32) -> (i32, i32) {
    %c0_i32 = arith.constant 0 : i32
    %c0_i32_0 = arith.constant 0 : i32
    return %arg0, %c0_i32 : i32, i32
  }
  func.func @transform_2(%arg0: i32) -> (i32, i32) {
    %c0_i32 = arith.constant 0 : i32
    %c0_i32_0 = arith.constant 0 : i32
    %c0_i32_1 = arith.constant 0 : i32
    return %c0_i32, %c0_i32_0 : i32, i32
  }
  func.func @transform_3(%arg0: i32) -> (i32, i32) {
    %c0_i32 = arith.constant 0 : i32
    %c0_i32_0 = arith.constant 0 : i32
    %c0_i32_1 = arith.constant 0 : i32
    return %c0_i32, %c0_i32_0 : i32, i32
  }
  func.func @transform_4(%arg0: i32) -> (i32, i32) {
    %c0_i32 = arith.constant 0 : i32
    %c0_i32_0 = arith.constant 0 : i32
    %c0_i32_1 = arith.constant 0 : i32
    return %c0_i32, %c0_i32_0 : i32, i32
  }
  func.func @transform_5(%arg0: i32) -> (i32, i32) {
    %c0_i32 = arith.constant 0 : i32
    %c0_i32_0 = arith.constant 0 : i32
    %c0_i32_1 = arith.constant 0 : i32
    return %c0_i32, %c0_i32_0 : i32, i32
  }
  func.func @transform_6(%arg0: i32) -> (i32, i32) {
    %c0_i32 = arith.constant 0 : i32
    %c0_i32_0 = arith.constant 0 : i32
    %c0_i32_1 = arith.constant 0 : i32
    return %c0_i32, %c0_i32_0 : i32, i32
  }
  func.func @transform_7(%arg0: i32) -> (i32, i32) {
    %c0_i32 = arith.constant 0 : i32
    %c0_i32_0 = arith.constant 0 : i32
    %c0_i32_1 = arith.constant 0 : i32
    return %c0_i32, %c0_i32_0 : i32, i32
  }
  func.func @transform_8(%arg0: i32) -> (i32, i32) {
    %c0_i32 = arith.constant 0 : i32
    %c0_i32_0 = arith.constant 0 : i32
    return %arg0, %c0_i32 : i32, i32
  }
  func.func @transform_9(%arg0: i32) -> (i32, i32) {
    %c0_i32 = arith.constant 0 : i32
    %c0_i32_0 = arith.constant 0 : i32
    return %arg0, %c0_i32 : i32, i32
  }
}

</mosaic_0001>

<bundles_post_ra>
// kernel: tpu_custom_call.1
= control target key start
LH: loop header
LB: loop body
LE: loop exit
PB: predicated region body
PF: predicated region fallthrough
CT: control target
= control target key end

     0   :  { %15 = vsyncpa [#allocation3], 0  ;;  %s1822_s0 = inlined_call_operand.hbm [shape: bf16[64,128], index: 0, kind: input, shape index: {}]   ;;  %s1823_s1 = inlined_call_operand.hbm [shape: f32[64,128], index: 1, kind: input, shape index: {}]   ;;  %s1824_s2 = inlined_call_operand.hbm [shape: bf16[128,512], index: 2, kind: input, shape index: {}]   ;;  %s1825_s3 = inlined_call_operand.hbm [shape: bf16[128,128], index: 3, kind: input, shape index: {}]   ;;  %s1826_s4 = inlined_call_operand.hbm [shape: bf16[128,128], index: 4, kind: input, shape index: {}]   ;;  %s1827_s5 = inlined_call_operand.hbm [shape: bf16[128,128], index: 5, kind: input, shape index: {}]   ;;  %s1828_s6 = inlined_call_operand.vmem [shape: f32[1,512], index: 6, kind: input, shape index: {}]   ;;  %s1829_s7 = inlined_call_operand.vmem [shape: f32[1,128], index: 7, kind: input, shape index: {}]   ;;  %s1830_s8 = inlined_call_operand.hbm [shape: f32[64,512], index: 8, kind: output, shape index: {0}]   ;;  %s1831_s9 = inlined_call_operand.hbm [shape: f32[64,128], index: 9, kind: output, shape index: {1}]  }
   0x1   :  { %16 = vsyncpa [#allocation6], 0 }
   0x2   :  { %17 = vsyncpa [#allocation9], 0 }
   0x3   :  { %18 = vsyncpa [#allocation12], 0 }
   0x4   :  { %19 = vsyncpa [#allocation4], 0 }
   0x5   :  { %20 = vsyncpa [#allocation15], 0  ;;  %s1556_s30 = smov [#allocation5]   ;;  %s1368_s13 = scalar_lea.hbm %s1823_s1, 1024 }
   0x6   :  { %s38_s10 = sshll.u32 %s1556_s30, 4  ;;  %p1369_p0 = scmp.ne.s32.totalorder %s1823_s1, %s1368_s13  ;;  %s39_s10 = int_to_ptr.vmem [resolvable:$true] %s38_s10 }
   0x7   :  { %p1372_p1 = scmp.lt.u32.totalorder %s1368_s13, %s1823_s1 }
   0x9   :  { %p1374_p2 = pnand %p1372_p1, %p1369_p0 }
   0xb   :  { %1377 = shalt.err (!%p1374_p2)
}
   0xc   :  { %s1378_s18 = scalar_lea.vmem %s39_s10, 1024  ;;  %p1383_p4 = scmp.lt.s32.totalorder %s39_s10, %s39_s10 }
   0xd   :  { %p1379_p3 = scmp.ne.s32.totalorder %s39_s10, %s1378_s18  ;;  %p1384_p5 = scmp.lt.s32.totalorder %s1378_s18, %s1378_s18 }
   0xf   :  { %p1385_p6 = por %p1384_p5, %p1383_p4 }
  0x11   :  { %p1386_p7 = pnand %p1385_p6, %p1379_p3 }
  0x13   :  { %1389 = shalt.err (!%p1386_p7)
}
  0x14   :  { %s1557_s19 = smov 128   ;;  %s1558_s20 = smov 8  }
  0x15   :  { %44 = dma.hbm_to_vmem [thread:$0]  %s1823_s1, 1024, %s39_s10, [#allocation6], %s1557_s19, %s1557_s19, %s1558_s20  }
  0x16   :  { %s1559_s23 = smov [#allocation8]   ;;  %s1560_s25 = smov [#allocation2]  }
  0x17   :  { %s62_s24 = sshll.u32 %s1559_s23, 4  ;;  %s26_s26 = sshll.u32 %s1560_s25, 4  ;;  %s63_s24 = int_to_ptr.vmem [resolvable:$true] %s62_s24  ;;  %s27_s26 = int_to_ptr.vmem [resolvable:$true] %s26_s26 }
  0x18   :  { %s1390_s29 = scalar_lea.hbm %s1825_s3, 1024 }
  0x19   :  { %p1391_p8 = scmp.ne.s32.totalorder %s1825_s3, %s1390_s29  ;;  %p1394_p9 = scmp.lt.u32.totalorder %s1390_s29, %s1825_s3 }
  0x1b   :  { %p1396_p10 = pnand %p1394_p9, %p1391_p8 }
  0x1d   :  { %1399 = shalt.err (!%p1396_p10)
}
  0x1e   :  { %s1400_s1 = scalar_lea.vmem %s63_s24, 1024  ;;  %p1405_p12 = scmp.lt.s32.totalorder %s63_s24, %s63_s24 }
  0x1f   :  { %p1401_p11 = scmp.ne.s32.totalorder %s63_s24, %s1400_s1  ;;  %p1406_p13 = scmp.lt.s32.totalorder %s1400_s1, %s1400_s1 }
  0x21   :  { %p1407_p0 = por %p1406_p13, %p1405_p12 }
  0x23   :  { %p1408_p1 = pnand %p1407_p0, %p1401_p11 }
  0x25   :  { %1411 = shalt.err (!%p1408_p1)
}
  0x26   :  { %s1561_s10 = smov 64   ;;  %s1562_s14 = smov 4  }
  0x27   :  { %68 = dma.hbm_to_vmem [thread:$0]  %s1825_s3, 1024, %s63_s24, [#allocation9], %s1561_s10, %s1561_s10, %s1562_s14  }
  0x28   :  { %s1412_s21 = scalar_lea.hbm %s1822_s0, 512 }
  0x29   :  { %p1413_p2 = scmp.ne.s32.totalorder %s1822_s0, %s1412_s21  ;;  %p1416_p3 = scmp.lt.u32.totalorder %s1412_s21, %s1822_s0 }
  0x2b   :  { %p1418_p4 = pnand %p1416_p3, %p1413_p2 }
  0x2d   :  { %1421 = shalt.err (!%p1418_p4)
}
  0x2e   :  { %s1422_s28 = scalar_lea.vmem %s27_s26, 512  ;;  %p1427_p6 = scmp.lt.s32.totalorder %s27_s26, %s27_s26 }
  0x2f   :  { %p1423_p5 = scmp.ne.s32.totalorder %s27_s26, %s1422_s28  ;;  %p1428_p7 = scmp.lt.s32.totalorder %s1422_s28, %s1422_s28 }
  0x31   :  { %p1429_p8 = por %p1428_p7, %p1427_p6 }
  0x33   :  { %p1430_p9 = pnand %p1429_p8, %p1423_p5 }
  0x35   :  { %1433 = shalt.err (!%p1430_p9)
}
  0x36   :  { %32 = dma.hbm_to_vmem [thread:$0]  %s1822_s0, 512, %s27_s26, [#allocation3], %s1561_s10, %s1561_s10, %s1562_s14  }
  0x37   :  { %s1563_s29 = smov [#allocation7]   ;;  %s1434_s13 = scalar_lea.hbm %s1824_s2, 4096 }
  0x38   :  { %s50_s30 = sshll.u32 %s1563_s29, 4  ;;  %p1435_p10 = scmp.ne.s32.totalorder %s1824_s2, %s1434_s13  ;;  %s51_s30 = int_to_ptr.vmem [resolvable:$true] %s50_s30 }
  0x39   :  { %p1438_p11 = scmp.lt.u32.totalorder %s1434_s13, %s1824_s2 }
  0x3b   :  { %p1440_p12 = pnand %p1438_p11, %p1435_p10 }
  0x3d   :  { %1443 = shalt.err (!%p1440_p12)
}
  0x3e   :  { %s1444_s18 = scalar_lea.vmem %s51_s30, 4096  ;;  %p1449_p0 = scmp.lt.s32.totalorder %s51_s30, %s51_s30 }
  0x3f   :  { %p1445_p13 = scmp.ne.s32.totalorder %s51_s30, %s1444_s18  ;;  %p1450_p1 = scmp.lt.s32.totalorder %s1444_s18, %s1444_s18 }
  0x41   :  { %p1451_p2 = por %p1450_p1, %p1449_p0 }
  0x43   :  { %p1452_p3 = pnand %p1451_p2, %p1445_p13 }
  0x45   :  { %1455 = shalt.err (!%p1452_p3)
}
  0x46   :  { %s1564_s0 = smov 256   ;;  %s1565_s26 = smov 16  }
  0x47   :  { %56 = dma.hbm_to_vmem [thread:$0]  %s1824_s2, 4096, %s51_s30, [#allocation6], %s1564_s0, %s1564_s0, %s1565_s26  }
  0x48   :  { %s1566_s23 = smov [#allocation10]   ;;  %s1567_s27 = smov [#allocation11]  }
  0x49   :  { %s74_s25 = sshll.u32 %s1566_s23, 4  ;;  %s86_s28 = sshll.u32 %s1567_s27, 4  ;;  %s75_s25 = int_to_ptr.vmem [resolvable:$true] %s74_s25  ;;  %s1680_s28 = int_to_ptr.vmem [resolvable:$true] %s86_s28 }
  0x4a   :  { %s1456_s29 = scalar_lea.hbm %s1826_s4, 1024 }
  0x4b   :  { %p1457_p4 = scmp.ne.s32.totalorder %s1826_s4, %s1456_s29  ;;  %p1460_p5 = scmp.lt.u32.totalorder %s1456_s29, %s1826_s4 }
  0x4d   :  { %p1462_p6 = pnand %p1460_p5, %p1457_p4 }
  0x4f   :  { %1465 = shalt.err (!%p1462_p6)
}
  0x50   :  { %s1466_s2 = scalar_lea.vmem %s75_s25, 1024  ;;  %p1471_p8 = scmp.lt.s32.totalorder %s75_s25, %s75_s25 }
  0x51   :  { %p1467_p7 = scmp.ne.s32.totalorder %s75_s25, %s1466_s2  ;;  %p1472_p9 = scmp.lt.s32.totalorder %s1466_s2, %s1466_s2 }
  0x53   :  { %p1473_p10 = por %p1472_p9, %p1471_p8 }
  0x55   :  { %p1474_p11 = pnand %p1473_p10, %p1467_p7 }
  0x57   :  { %1477 = shalt.err (!%p1474_p11)
}
  0x58   :  { %80 = dma.hbm_to_vmem [thread:$0]  %s1826_s4, 1024, %s75_s25, [#allocation9], %s1561_s10, %s1561_s10, %s1562_s14  }
  0x59   :  { %s1478_s18 = scalar_lea.hbm %s1827_s5, 1024 }
  0x5a   :  { %p1479_p12 = scmp.ne.s32.totalorder %s1827_s5, %s1478_s18  ;;  %p1482_p13 = scmp.lt.u32.totalorder %s1478_s18, %s1827_s5 }
  0x5c   :  { %p1484_p0 = pnand %p1482_p13, %p1479_p12 }
  0x5e   :  { %1487 = shalt.err (!%p1484_p0)
}
  0x5f   :  { %s1488_s23 = scalar_lea.vmem %s1680_s28, 1024  ;;  %p1493_p2 = scmp.lt.s32.totalorder %s1680_s28, %s1680_s28 }
  0x60   :  { %p1489_p1 = scmp.ne.s32.totalorder %s1680_s28, %s1488_s23  ;;  %p1494_p3 = scmp.lt.s32.totalorder %s1488_s23, %s1488_s23 }
  0x62   :  { %p1495_p4 = por %p1494_p3, %p1493_p2 }
  0x64   :  { %p1496_p5 = pnand %p1495_p4, %p1489_p1 }
  0x66   :  { %1499 = shalt.err (!%p1496_p5)
}
  0x67   :  { %92 = dma.hbm_to_vmem [thread:$0]  %s1827_s5, 1024, %s1680_s28, [#allocation12], %s1561_s10, %s1561_s10, %s1562_s14  }
  0x68   :  { %1544 = dma.done.wait [#allocation3], 512  }
  0x69   :  { %1545 = vsyncadd [#allocation3], 4294966784 }
  0x6a   :  { %1546 = dma.done.wait [#allocation6], 5120  }
  0x6b   :  { %1547 = vsyncadd [#allocation6], 4294962176 }
  0x6c   :  { %1548 = dma.done.wait [#allocation9], 2048  }
  0x6d   :  { %1549 = vsyncadd [#allocation9], 4294965248 }
  0x6e   :  { %1550 = dma.done.wait [#allocation12], 1024  }
  0x6f   :  { %1551 = vsyncadd [#allocation12], 4294966272  ;;  %v1568_v0 = vmov 0   ;;  %v1260_v1 = vld [vmem:[#allocation7 + $0x4] ss:$16 sps:$4 sm:$0xff]   ;;  %v1286_v19 = vld [vmem:[#allocation10 + $0x8] sm:$0xff]  }
  0x70   :  { %402 = vmatprep.mubr.bf16.mxu0 %v1568_v0  ;;  %475 = vmatprep.mubr.bf16.mxu1 %v1568_v0  ;;  %v1262_v2 = vld [vmem:[#allocation7] ss:$16 sps:$4 sm:$0xff]   ;;  %v1263_v3 = vld [vmem:[#allocation7 + $0x24] ss:$16 sps:$4 sm:$0xff]   ;;  %v1723_v21 = vld [vmem:[#allocation2 + $0x8] sm:$0xff]  }
  0x71   :  { %370 = vmatprep.subr.bf16.mxu0 %v1260_v1  ;;  %v1265_v4 = vld [vmem:[#allocation7 + $0x20] ss:$16 sps:$4 sm:$0xff]   ;;  %v1266_v5 = vld [vmem:[#allocation7 + $0x44] ss:$16 sps:$4 sm:$0xff]   ;;  %v1289_v22 = vld [vmem:[#allocation10 + $0x18] sm:$0xff]  }
  0x72   :  { %371 = vmatpush1.bf16.msra.mxu0 %v1262_v2  ;;  %v1268_v6 = vld [vmem:[#allocation7 + $0x40] ss:$16 sps:$4 sm:$0xff]   ;;  %v1269_v7 = vld [vmem:[#allocation7 + $0x64] ss:$16 sps:$4 sm:$0xff]   ;;  %v1292_v25 = vld [vmem:[#allocation10 + $0x28] sm:$0xff]  }
  0x73   :  { %372 = vmatprep.subr.bf16.mxu0 %v1263_v3  ;;  %v1271_v8 = vld [vmem:[#allocation7 + $0x60] ss:$16 sps:$4 sm:$0xff]   ;;  %v1272_v9 = vld [vmem:[#allocation7 + $0x84] ss:$16 sps:$4 sm:$0xff]   ;;  %v1733_v28 = vld [vmem:[#allocation5 + $0x8] sm:$0xff] }
  0x74   :  { %v1274_v10 = vld [vmem:[#allocation7 + $0x80] ss:$16 sps:$4 sm:$0xff]   ;;  %v1275_v11 = vld [vmem:[#allocation7 + $0xa4] ss:$16 sps:$4 sm:$0xff]   ;;  %v1735_v29 = vld [vmem:[#allocation2 + $0x18] sm:$0xff]  }
  0x75   :  { %v1277_v12 = vld [vmem:[#allocation7 + $0xa0] ss:$16 sps:$4 sm:$0xff]   ;;  %v1278_v13 = vld [vmem:[#allocation7 + $0xc4] ss:$16 sps:$4 sm:$0xff]   ;;  %v1295_v31 = vld [vmem:[#allocation10 + $0x38] sm:$0xff]  }
  0x76   :  { %373 = vmatpush1.bf16.msra.mxu0 %v1265_v4  ;;  %v1280_v14 = vld [vmem:[#allocation7 + $0xc0] ss:$16 sps:$4 sm:$0xff]   ;;  %v1281_v15 = vld [vmem:[#allocation7 + $0xe4] ss:$16 sps:$4 sm:$0xff]   ;;  %v1742_v33 = vld [vmem:[#allocation5 + $0x18] sm:$0xff] }
  0x77   :  { %374 = vmatprep.subr.bf16.mxu0 %v1266_v5  ;;  %v1283_v16 = vld [vmem:[#allocation7 + $0xe0] ss:$16 sps:$4 sm:$0xff]   ;;  %v1746_v36 = vld [vmem:[#allocation5 + $0x28] sm:$0xff]  ;;  %v1754_v41 = vld [vmem:[#allocation5 + $0x38] sm:$0xff] }
  0x78   :  { %v1285_v17 = vld [vmem:[#allocation10] sm:$0xff]   ;;  %v1288_v20 = vld [vmem:[#allocation10 + $0x10] sm:$0xff]   ;;  %v1297_v39 = vld [vmem:[#allocation8 + $0x8] sm:$0xff]  }
  0x79   :  { %v1719_v18 = vld [vmem:[#allocation2] sm:$0xff]   ;;  %v1727_v24 = vld [vmem:[#allocation2 + $0x10] sm:$0xff]   ;;  %v1299_v44 = vld [vmem:[#allocation8 + $0x18] sm:$0xff]  }
  0x7a   :  { %375 = vmatpush1.bf16.msra.mxu0 %v1268_v6  ;;  %v1291_v23 = vld [vmem:[#allocation10 + $0x20] sm:$0xff]   ;;  %v1294_v26 = vld [vmem:[#allocation10 + $0x30] sm:$0xff]   ;;  %v1301_v46 = vld [vmem:[#allocation8 + $0x28] sm:$0xff]  }
  0x7b   :  { %376 = vmatprep.subr.bf16.mxu0 %v1269_v7  ;;  %v1731_v27 = vld [vmem:[#allocation5] sm:$0xff]  ;;  %v1740_v32 = vld [vmem:[#allocation5 + $0x10] sm:$0xff]  ;;  %v1303_v48 = vld [vmem:[#allocation8 + $0x38] sm:$0xff]  }
  0x7c   :  { %v564_v30 = vpack.c.bf16 %v1733_v28, %v1731_v27  ;;  %v1296_v34 = vld [vmem:[#allocation8] sm:$0xff]   ;;  %v565_v37 = vpack.c.bf16 %v1742_v33, %v1740_v32  ;;  %v1752_v40 = vld [vmem:[#allocation5 + $0x30] sm:$0xff]  ;;  %v1304_v49 = vld [vmem:[#allocation7 + $0xc] ss:$16 sps:$4 sm:$0xff]  }
  0x7d   :  { %v1744_v35 = vld [vmem:[#allocation5 + $0x20] sm:$0xff]  ;;  %v1298_v42 = vld [vmem:[#allocation8 + $0x10] sm:$0xff]   ;;  %v567_v43 = vpack.c.bf16 %v1754_v41, %v1752_v40  ;;  %v1306_v50 = vld [vmem:[#allocation7 + $0x8] ss:$16 sps:$4 sm:$0xff]   ;;  %443 = vmatprep.subr.bf16.mxu1 %v1304_v49 }
  0x7e   :  { %377 = vmatpush1.bf16.msra.mxu0 %v1271_v8  ;;  %v566_v38 = vpack.c.bf16 %v1746_v36, %v1744_v35  ;;  %v1300_v45 = vld [vmem:[#allocation8 + $0x20] sm:$0xff]   ;;  %v1302_v47 = vld [vmem:[#allocation8 + $0x30] sm:$0xff]   ;;  %v1307_v51 = vld [vmem:[#allocation7 + $0x2c] ss:$16 sps:$4 sm:$0xff]   ;;  %444 = vmatpush1.bf16.msra.mxu1 %v1306_v50 }
  0x7f   :  { %378 = vmatprep.subr.bf16.mxu0 %v1272_v9  ;;  %v1309_v52 = vld [vmem:[#allocation7 + $0x28] ss:$16 sps:$4 sm:$0xff]   ;;  %445 = vmatprep.subr.bf16.mxu1 %v1307_v51  ;;  %v1310_v53 = vld [vmem:[#allocation7 + $0x4c] ss:$16 sps:$4 sm:$0xff]   ;;  %v1328_v2 = vld [vmem:[#allocation11] sm:$0xff]  }
  0x80   :  { %v1312_v54 = vld [vmem:[#allocation7 + $0x48] ss:$16 sps:$4 sm:$0xff]   ;;  %v1313_v55 = vld [vmem:[#allocation7 + $0x6c] ss:$16 sps:$4 sm:$0xff]   ;;  %v1330_v4 = vld [vmem:[#allocation11 + $0x10] sm:$0xff]  }
  0x81   :  { %v1315_v56 = vld [vmem:[#allocation7 + $0x68] ss:$16 sps:$4 sm:$0xff]   ;;  %v1316_v57 = vld [vmem:[#allocation7 + $0x8c] ss:$16 sps:$4 sm:$0xff]   ;;  %v1332_v6 = vld [vmem:[#allocation11 + $0x20] sm:$0xff]  }
  0x82   :  { %379 = vmatpush1.bf16.msra.mxu0 %v1274_v10  ;;  %446 = vmatpush1.bf16.msra.mxu1 %v1309_v52  ;;  %v1318_v58 = vld [vmem:[#allocation7 + $0x88] ss:$16 sps:$4 sm:$0xff]   ;;  %v1319_v59 = vld [vmem:[#allocation7 + $0xac] ss:$16 sps:$4 sm:$0xff]   ;;  %v1334_v8 = vld [vmem:[#allocation11 + $0x30] sm:$0xff]   ;;  %v166_v10 = vlaneseq }
  0x83   :  { %380 = vmatprep.subr.bf16.mxu0 %v1275_v11  ;;  %447 = vmatprep.subr.bf16.mxu1 %v1310_v53  ;;  %v1321_v60 = vld [vmem:[#allocation7 + $0xa8] ss:$16 sps:$4 sm:$0xff]   ;;  %v1322_v61 = vld [vmem:[#allocation7 + $0xcc] ss:$16 sps:$4 sm:$0xff]  }
  0x84   :  { %v1324_v62 = vld [vmem:[#allocation7 + $0xc8] ss:$16 sps:$4 sm:$0xff]   ;;  %v1325_v63 = vld [vmem:[#allocation7 + $0xec] ss:$16 sps:$4 sm:$0xff]   ;;  %v1769_v11 = vshrl.u32 %v166_v10, 7 }
  0x85   :  { %v1327_v1 = vld [vmem:[#allocation7 + $0xe8] ss:$16 sps:$4 sm:$0xff]  }
  0x86   :  { %381 = vmatpush1.bf16.msra.mxu0 %v1277_v12  ;;  %448 = vmatpush1.bf16.msra.mxu1 %v1312_v54  ;;  %v1329_v3 = vld [vmem:[#allocation11 + $0x8] sm:$0xff]   ;;  %v1331_v5 = vld [vmem:[#allocation11 + $0x18] sm:$0xff]   ;;  %v1775_v12 = vld [vmem:[%s1828_s6] sm:$0xf] }
  0x87   :  { %382 = vmatprep.subr.bf16.mxu0 %v1278_v13  ;;  %449 = vmatprep.subr.bf16.mxu1 %v1313_v55  ;;  %v1333_v7 = vld [vmem:[#allocation11 + $0x28] sm:$0xff]   ;;  %v1335_v9 = vld [vmem:[#allocation11 + $0x38] sm:$0xff]   ;;  %v172_v13 = vsub.s32 1, %v1769_v11 }
  0x8a   :  { %383 = vmatpush1.bf16.msra.mxu0 %v1280_v14  ;;  %450 = vmatpush1.bf16.msra.mxu1 %v1315_v56  ;;  %v1110_v56 = vld [vmem:[%s1829_s7] ss:$0 sm:$0xff]  ;;  %s1569_s7 = smov [#allocation13]  }
  0x8b   :  { %384 = vmatprep.subr.bf16.mxu0 %v1281_v15  ;;  %451 = vmatprep.subr.bf16.mxu1 %v1316_v57  ;;  %v173_v15 = vrot.slane %v1775_v12, %v172_v13  ;;  %s1027_s27 = sshll.u32 %s1569_s7, 4  ;;  %s1028_s27 = int_to_ptr.vmem [resolvable:$true] %s1027_s27 }
  0x8c   :  { %s1500_s28 = scalar_lea.vmem %s1028_s27, 4096  ;;  %p1505_p7 = scmp.lt.s32.totalorder %s1028_s27, %s1028_s27 }
  0x8d   :  { %p1501_p6 = scmp.ne.s32.totalorder %s1028_s27, %s1500_s28  ;;  %p1506_p8 = scmp.lt.s32.totalorder %s1500_s28, %s1500_s28 }
  0x8e   :  { %385 = vmatpush1.bf16.msra.mxu0 %v1283_v16  ;;  %452 = vmatpush1.bf16.msra.mxu1 %v1318_v58 }
  0x8f   :  { %1163 = vmatprep.subr.bf16.mxu0 %v1285_v17  ;;  %453 = vmatprep.subr.bf16.mxu1 %v1319_v59  ;;  %p1507_p9 = por %p1506_p8, %p1505_p7 }
  0x91   :  { %403 = vmatmul.mubr.bf16.vlgmr.msra.gmra.mrb[0].mxu0 %v1719_v18  ;;  %p1508_p10 = pnand %p1507_p9, %p1501_p6 }
  0x92   :  { %1164 = vmatpush3.bf16.msra.mxu0 %v1285_v17  ;;  %412 = vmatprep.mubr.bf16.mxu0 %v1568_v0 }
  0x93   :  { %1165 = vmatprep.subr.bf16.mxu0 %v1286_v19  ;;  %454 = vmatpush1.bf16.msra.mxu1 %v1321_v60 }
  0x94   :  { %455 = vmatprep.subr.bf16.mxu1 %v1322_v61 }
  0x96   :  { %1166 = vmatpush3.bf16.msra.mxu0 %v1286_v19 }
  0x97   :  { %1167 = vmatprep.subr.bf16.mxu0 %v1288_v20  ;;  %456 = vmatpush1.bf16.msra.mxu1 %v1324_v62 }
  0x98   :  { %457 = vmatprep.subr.bf16.mxu1 %v1325_v63 }
  0x99   :  { %413 = vmatmul.mubr.bf16.gmra.mrb[4].mxu0 %v1723_v21 }
  0x9a   :  { %1168 = vmatpush3.bf16.msra.mxu0 %v1288_v20  ;;  %422 = vmatprep.mubr.bf16.mxu0 %v1568_v0 }
  0x9b   :  { %1169 = vmatprep.subr.bf16.mxu0 %v1289_v22  ;;  %458 = vmatpush1.bf16.msra.mxu1 %v1327_v1 }
  0x9c   :  { %1211 = vmatprep.subr.bf16.mxu1 %v1328_v2 }
  0x9e   :  { %1170 = vmatpush3.bf16.msra.mxu0 %v1289_v22  ;;  %476 = vmatmul.mubr.bf16.vlgmr.msra.gmra.mrb[0].mxu1 %v1719_v18 }
  0x9f   :  { %1171 = vmatprep.subr.bf16.mxu0 %v1291_v23  ;;  %485 = vmatprep.mubr.bf16.mxu1 %v1568_v0 }
  0xa0   :  { %1212 = vmatpush3.bf16.msra.mxu1 %v1328_v2 }
  0xa1   :  { %423 = vmatmul.mubr.bf16.gmra.mrb[8].mxu0 %v1727_v24  ;;  %1213 = vmatprep.subr.bf16.mxu1 %v1329_v3 }
  0xa2   :  { %1172 = vmatpush3.bf16.msra.mxu0 %v1291_v23  ;;  %432 = vmatprep.mubr.bf16.mxu0 %v1568_v0 }
  0xa3   :  { %1173 = vmatprep.subr.bf16.mxu0 %v1292_v25 }
  0xa4   :  { %1214 = vmatpush3.bf16.msra.mxu1 %v1329_v3 }
  0xa5   :  { %1215 = vmatprep.subr.bf16.mxu1 %v1330_v4 }
  0xa6   :  { %1174 = vmatpush3.bf16.msra.mxu0 %v1292_v25  ;;  %486 = vmatmul.mubr.bf16.gmra.mrb[4].mxu1 %v1723_v21 }
  0xa7   :  { %1175 = vmatprep.subr.bf16.mxu0 %v1294_v26  ;;  %495 = vmatprep.mubr.bf16.mxu1 %v1568_v0 }
  0xa8   :  { %1216 = vmatpush3.bf16.msra.mxu1 %v1330_v4 }
  0xa9   :  { %433 = vmatmul.mubr.bf16.gmra.mrb[12].mxu0 %v1735_v29  ;;  %1217 = vmatprep.subr.bf16.mxu1 %v1331_v5 }
  0xaa   :  { %1176 = vmatpush3.bf16.msra.mxu0 %v1294_v26  ;;  %1179 = vmatprep.mubr.bf16.mxu0 %v564_v30 }
  0xab   :  { %1177 = vmatprep.subr.bf16.mxu0 %v1295_v31 }
  0xac   :  { %1218 = vmatpush3.bf16.msra.mxu1 %v1331_v5 }
  0xad   :  { %1219 = vmatprep.subr.bf16.mxu1 %v1332_v6 }
  0xae   :  { %1178 = vmatpush3.bf16.msra.mxu0 %v1295_v31  ;;  %496 = vmatmul.mubr.bf16.gmra.mrb[8].mxu1 %v1727_v24 }
  0xaf   :  { %1187 = vmatprep.subr.bf16.mxu0 %v1296_v34  ;;  %505 = vmatprep.mubr.bf16.mxu1 %v1568_v0  ;;  %v168_v0 = vsub.s32 0, %v1769_v11 }
  0xb0   :  { %1220 = vmatpush3.bf16.msra.mxu1 %v1332_v6 }
  0xb1   :  { %1180 = vmatmul.mubr.bf16.vlgmr.msra.gmra.mrb[16].mxu0 %v565_v37  ;;  %1221 = vmatprep.subr.bf16.mxu1 %v1333_v7  ;;  %v169_v14 = vrot.slane %v1775_v12, %v168_v0 }
  0xb2   :  { %1188 = vmatpush3.bf16.msra.mxu0 %v1296_v34  ;;  %1183 = vmatprep.mubr.bf16.mxu0 %v566_v38 }
  0xb3   :  { %1189 = vmatprep.subr.bf16.mxu0 %v1297_v39 }
  0xb4   :  { %1222 = vmatpush3.bf16.msra.mxu1 %v1333_v7 }
  0xb5   :  { %1223 = vmatprep.subr.bf16.mxu1 %v1334_v8 }
  0xb6   :  { %1190 = vmatpush3.bf16.msra.mxu0 %v1297_v39  ;;  %506 = vmatmul.mubr.bf16.gmra.mrb[12].mxu1 %v1735_v29 }
  0xb7   :  { %1191 = vmatprep.subr.bf16.mxu0 %v1298_v42 }
  0xb8   :  { %1224 = vmatpush3.bf16.msra.mxu1 %v1334_v8 }
  0xb9   :  { %1184 = vmatmul.mubr.bf16.gmra.mrb[20].mxu0 %v567_v43  ;;  %1225 = vmatprep.subr.bf16.mxu1 %v1335_v9 }
  0xba   :  { %1192 = vmatpush3.bf16.msra.mxu0 %v1298_v42  ;;  %1203 = vmatprep.mubr.bf16.mxu0 %v1719_v18 }
  0xbb   :  { %1193 = vmatprep.subr.bf16.mxu0 %v1299_v44 }
  0xbc   :  { %1226 = vmatpush3.bf16.msra.mxu1 %v1335_v9 }
  0xbe   :  { %1194 = vmatpush3.bf16.msra.mxu0 %v1299_v44 }
  0xbf   :  { %1195 = vmatprep.subr.bf16.mxu0 %v1300_v45 }
  0xc2   :  { %1196 = vmatpush3.bf16.msra.mxu0 %v1300_v45 }
  0xc3   :  { %1197 = vmatprep.subr.bf16.mxu0 %v1301_v46 }
  0xc6   :  { %1198 = vmatpush3.bf16.msra.mxu0 %v1301_v46 }
  0xc7   :  { %1199 = vmatprep.subr.bf16.mxu0 %v1302_v47 }
  0xca   :  { %1200 = vmatpush3.bf16.msra.mxu0 %v1302_v47 }
  0xcb   :  { %1201 = vmatprep.subr.bf16.mxu0 %v1303_v48 }
  0xce   :  { %1202 = vmatpush3.bf16.msra.mxu0 %v1303_v48 }
  0xd1   :  { %1204 = vmatmul.mubr.bf16.vlgmr.msra.gmra.mrb[16].mxu0 %v1723_v21 }
  0xd2   :  { %1207 = vmatprep.mubr.bf16.mxu0 %v1727_v24 }
  0xd9   :  { %1208 = vmatmul.mubr.bf16.gmra.mrb[20].mxu0 %v1735_v29 }
 0x164   :  { %v404_v16 = vpop.f32.mrb[0].mxu0 }
 0x165   :  { %v405_v17 = vadd.f32 %v404_v16, %v169_v14  ;;  %v406_v18 = vpop.f32.mrb[1].mxu0 }
 0x166   :  { %v407_v19 = vadd.f32 %v406_v18, %v173_v15  ;;  %v408_v20 = vpop.f32.mrb[2].mxu0 }
 0x167   :  { %516 = vst [vmem:[#allocation13] sm:$0xff] %v405_v17  ;;  %v409_v21 = vadd.f32 %v408_v20, %v169_v14  ;;  %v410_v22 = vpop.f32.mrb[3].mxu0 }
 0x168   :  { %517 = vst [vmem:[#allocation13 + $0x8] sm:$0xff] %v407_v19  ;;  %v411_v23 = vadd.f32 %v410_v22, %v173_v15 }
 0x169   :  { %520 = vst [vmem:[#allocation13 + $0x20] sm:$0xff] %v409_v21 }
 0x16a   :  { %521 = vst [vmem:[#allocation13 + $0x28] sm:$0xff] %v411_v23 }
 0x16c   :  { %v414_v24 = vpop.f32.mrb[4].mxu0 }
 0x16d   :  { %v415_v25 = vadd.f32 %v414_v24, %v169_v14  ;;  %v416_v26 = vpop.f32.mrb[5].mxu0 }
 0x16e   :  { %v417_v29 = vadd.f32 %v416_v26, %v173_v15  ;;  %v418_v30 = vpop.f32.mrb[6].mxu0 }
 0x16f   :  { %524 = vst [vmem:[#allocation13 + $0x40] sm:$0xff] %v415_v25  ;;  %v419_v31 = vadd.f32 %v418_v30, %v169_v14  ;;  %v420_v34 = vpop.f32.mrb[7].mxu0 }
 0x170   :  { %525 = vst [vmem:[#allocation13 + $0x48] sm:$0xff] %v417_v29  ;;  %v421_v37 = vadd.f32 %v420_v34, %v173_v15 }
 0x171   :  { %528 = vst [vmem:[#allocation13 + $0x60] sm:$0xff] %v419_v31 }
 0x172   :  { %529 = vst [vmem:[#allocation13 + $0x68] sm:$0xff] %v421_v37 }
 0x174   :  { %v424_v38 = vpop.f32.mrb[8].mxu0 }
 0x175   :  { %v425_v39 = vadd.f32 %v424_v38, %v169_v14  ;;  %v426_v42 = vpop.f32.mrb[9].mxu0 }
 0x176   :  { %v427_v43 = vadd.f32 %v426_v42, %v173_v15  ;;  %v428_v44 = vpop.f32.mrb[10].mxu0 }
 0x177   :  { %532 = vst [vmem:[#allocation13 + $0x80] sm:$0xff] %v425_v39  ;;  %v429_v45 = vadd.f32 %v428_v44, %v169_v14  ;;  %v430_v46 = vpop.f32.mrb[11].mxu0 }
 0x178   :  { %533 = vst [vmem:[#allocation13 + $0x88] sm:$0xff] %v427_v43  ;;  %v431_v47 = vadd.f32 %v430_v46, %v173_v15 }
 0x179   :  { %536 = vst [vmem:[#allocation13 + $0xa0] sm:$0xff] %v429_v45 }
 0x17a   :  { %537 = vst [vmem:[#allocation13 + $0xa8] sm:$0xff] %v431_v47 }
 0x17c   :  { %v434_v48 = vpop.f32.mrb[12].mxu0 }
 0x17d   :  { %v435_v49 = vadd.f32 %v434_v48, %v169_v14  ;;  %v436_v50 = vpop.f32.mrb[13].mxu0 }
 0x17e   :  { %v437_v51 = vadd.f32 %v436_v50, %v173_v15  ;;  %v438_v52 = vpop.f32.mrb[14].mxu0 }
 0x17f   :  { %540 = vst [vmem:[#allocation13 + $0xc0] sm:$0xff] %v435_v49  ;;  %v439_v53 = vadd.f32 %v438_v52, %v169_v14  ;;  %v440_v54 = vpop.f32.mrb[15].mxu0 }
 0x180   :  { %541 = vst [vmem:[#allocation13 + $0xc8] sm:$0xff] %v437_v51  ;;  %v441_v55 = vadd.f32 %v440_v54, %v173_v15 }
 0x181   :  { %544 = vst [vmem:[#allocation13 + $0xe0] sm:$0xff] %v439_v53 }
 0x182   :  { %545 = vst [vmem:[#allocation13 + $0xe8] sm:$0xff] %v441_v55 }
 0x1a4   :  { %v1205_v57 = vpop.f32.mrb[16].mxu0 }
 0x1a5   :  { %v819_v58 = vadd.f32 %v1205_v57, %v1110_v56  ;;  %v779_v59 = vpop.f32.mrb[17].mxu0 }
 0x1a6   :  { %v817_v60 = vadd.f32 %v1110_v56, %v779_v59  ;;  %v1206_v61 = vpop.f32.mrb[18].mxu0 }
 0x1a7   :  { %v1113_v62 = vmul.f32 -1.442695, %v819_v58  ;;  %v820_v63 = vadd.f32 %v1206_v61, %v1110_v56  ;;  %v782_v1 = vpop.f32.mrb[19].mxu0 }
 0x1a8   :  { %v1111_v2 = vmul.f32 -1.442695, %v817_v60  ;;  %v818_v3 = vadd.f32 %v1110_v56, %v782_v1  ;;  %v180_v60 = vsub.s32 3, %v1769_v11 }
 0x1a9   :  { %1336 = vpow2.f32 %v1113_v62  ;;  %v1114_v4 = vmul.f32 -1.442695, %v820_v63  ;;  %v477_v63 = vpop.f32.mrb[0].mxu1 }
 0x1aa   :  { %1338 = vpow2.f32 %v1111_v2  ;;  %v1112_v5 = vmul.f32 -1.442695, %v818_v3  ;;  %v181_v62 = vrot.slane %v1775_v12, %v180_v60  ;;  %v479_v1 = vpop.f32.mrb[1].mxu1 }
 0x1ab   :  { %1340 = vpow2.f32 %v1114_v4  ;;  %v481_v2 = vpop.f32.mrb[2].mxu1 }
 0x1ac   :  { %1342 = vpow2.f32 %v1112_v5  ;;  %v1209_v6 = vpop.f32.mrb[20].mxu0 }
 0x1ad   :  { %v823_v7 = vadd.f32 %v1209_v6, %v1110_v56  ;;  %v795_v8 = vpop.f32.mrb[21].mxu0 }
 0x1ae   :  { %v821_v9 = vadd.f32 %v1110_v56, %v795_v8  ;;  %v1210_v10 = vpop.f32.mrb[22].mxu0 }
 0x1af   :  { %v1117_v0 = vmul.f32 -1.442695, %v823_v7  ;;  %v824_v13 = vadd.f32 %v1210_v10, %v1110_v56  ;;  %v798_v14 = vpop.f32.mrb[23].mxu0 }
 0x1b0   :  { %v1115_v15 = vmul.f32 -1.442695, %v821_v9  ;;  %v822_v16 = vadd.f32 %v1110_v56, %v798_v14 }
 0x1b1   :  { %1344 = vpow2.f32 %v1117_v0  ;;  %v1118_v17 = vmul.f32 -1.442695, %v824_v13 }
 0x1b2   :  { %1346 = vpow2.f32 %v1115_v15  ;;  %v1116_v18 = vmul.f32 -1.442695, %v822_v16 }
 0x1b3   :  { %v1337_v19 = vpop.eup %1336  ;;  %1348 = vpow2.f32 %v1118_v17 }
 0x1b4   :  { %v1339_v20 = vpop.eup %1338  ;;  %v851_v21 = vadd.f32 1.0, %v1337_v19  ;;  %1350 = vpow2.f32 %v1116_v18 }
 0x1b5   :  { %v1341_v22 = vpop.eup %1340  ;;  %v849_v23 = vadd.f32 1.0, %v1339_v20 }
 0x1b6   :  { %v1343_v24 = vpop.eup %1342  ;;  %1352 = vrcp.f32 %v851_v21  ;;  %v852_v25 = vadd.f32 1.0, %v1341_v22 }
 0x1b7   :  { %1354 = vrcp.f32 %v849_v23  ;;  %v850_v26 = vadd.f32 1.0, %v1343_v24 }
 0x1b8   :  { %1356 = vrcp.f32 %v852_v25 }
 0x1b9   :  { %1358 = vrcp.f32 %v850_v26 }
 0x1bb   :  { %v1345_v29 = vpop.eup %1344 }
 0x1bc   :  { %v1347_v30 = vpop.eup %1346  ;;  %v855_v31 = vadd.f32 1.0, %v1345_v29 }
 0x1bd   :  { %v1349_v34 = vpop.eup %1348  ;;  %v853_v37 = vadd.f32 1.0, %v1347_v30 }
 0x1be   :  { %v1351_v38 = vpop.eup %1350  ;;  %1360 = vrcp.f32 %v855_v31  ;;  %v856_v39 = vadd.f32 1.0, %v1349_v34 }
 0x1bf   :  { %1362 = vrcp.f32 %v853_v37  ;;  %v854_v42 = vadd.f32 1.0, %v1351_v38 }
 0x1c0   :  { %v1353_v43 = vpop.eup %1352  ;;  %1364 = vrcp.f32 %v856_v39 }
 0x1c1   :  { %v1355_v44 = vpop.eup %1354  ;;  %1366 = vrcp.f32 %v854_v42  ;;  %v875_v47 = vmul.f32 %v1353_v43, %v1740_v32 }
 0x1c2   :  { %v1357_v45 = vpop.eup %1356  ;;  %v873_v49 = vmul.f32 %v1355_v44, %v1731_v27 }
 0x1c3   :  { %v1359_v46 = vpop.eup %1358  ;;  %v876_v48 = vmul.f32 %v1357_v45, %v1742_v33 }
 0x1c4   :  { %v874_v50 = vmul.f32 %v1359_v46, %v1733_v28  ;;  %v176_v28 = vsub.s32 2, %v1769_v11 }
 0x1c5   :  { %v882_v51 = vpack.c.bf16 %v876_v48, %v875_v47 }
 0x1c6   :  { %v881_v52 = vpack.c.bf16 %v874_v50, %v873_v49  ;;  %v177_v61 = vrot.slane %v1775_v12, %v176_v28 }
 0x1c8   :  { %v1361_v53 = vpop.eup %1360  ;;  %1227 = vmatprep.mubr.bf16.mxu1 %v881_v52 }
 0x1c9   :  { %v1363_v54 = vpop.eup %1362  ;;  %1228 = vmatmul.mubr.bf16.vlgmr.msra.gmra.mrb[16].mxu1 %v882_v51  ;;  %v879_v57 = vmul.f32 %v1361_v53, %v1752_v40  ;;  %v478_v40 = vadd.f32 %v477_v63, %v177_v61 }
 0x1ca   :  { %v1365_v55 = vpop.eup %1364  ;;  %v877_v32 = vmul.f32 %v1363_v54, %v1744_v35  ;;  %v482_v35 = vadd.f32 %v481_v2, %v177_v61 }
 0x1cb   :  { %v1367_v56 = vpop.eup %1366  ;;  %v880_v58 = vmul.f32 %v1365_v55, %v1754_v41  ;;  %v480_v41 = vadd.f32 %v479_v1, %v181_v62  ;;  %518 = vst [vmem:[#allocation13 + $0x10] sm:$0xff] %v478_v40 }
 0x1cc   :  { %v878_v33 = vmul.f32 %v1367_v56, %v1746_v36  ;;  %v483_v36 = vpop.f32.mrb[3].mxu1  ;;  %522 = vst [vmem:[#allocation13 + $0x30] sm:$0xff] %v482_v35 }
 0x1cd   :  { %v884_v59 = vpack.c.bf16 %v880_v58, %v879_v57  ;;  %519 = vst [vmem:[#allocation13 + $0x18] sm:$0xff] %v480_v41  ;;  %v484_v3 = vadd.f32 %v483_v36, %v181_v62  ;;  %v487_v4 = vpop.f32.mrb[4].mxu1 }
 0x1ce   :  { %v883_v27 = vpack.c.bf16 %v878_v33, %v877_v32  ;;  %v488_v5 = vadd.f32 %v487_v4, %v177_v61  ;;  %v489_v6 = vpop.f32.mrb[5].mxu1 }
 0x1cf   :  { %523 = vst [vmem:[#allocation13 + $0x38] sm:$0xff] %v484_v3  ;;  %v490_v11 = vadd.f32 %v489_v6, %v181_v62  ;;  %v491_v7 = vpop.f32.mrb[6].mxu1 }
 0x1d0   :  { %1231 = vmatprep.mubr.bf16.mxu1 %v883_v27  ;;  %526 = vst [vmem:[#allocation13 + $0x50] sm:$0xff] %v488_v5  ;;  %v492_v8 = vadd.f32 %v491_v7, %v177_v61  ;;  %v493_v12 = vpop.f32.mrb[7].mxu1 }
 0x1d1   :  { %1232 = vmatmul.mubr.bf16.gmra.mrb[20].mxu1 %v884_v59  ;;  %527 = vst [vmem:[#allocation13 + $0x58] sm:$0xff] %v490_v11  ;;  %v494_v9 = vadd.f32 %v493_v12, %v181_v62  ;;  %v497_v10 = vpop.f32.mrb[8].mxu1 }
 0x1d2   :  { %530 = vst [vmem:[#allocation13 + $0x70] sm:$0xff] %v492_v8  ;;  %v498_v0 = vadd.f32 %v497_v10, %v177_v61  ;;  %v499_v13 = vpop.f32.mrb[9].mxu1 }
 0x1d3   :  { %531 = vst [vmem:[#allocation13 + $0x78] sm:$0xff] %v494_v9  ;;  %v500_v14 = vadd.f32 %v499_v13, %v181_v62  ;;  %v501_v15 = vpop.f32.mrb[10].mxu1 }
 0x1d4   :  { %534 = vst [vmem:[#allocation13 + $0x90] sm:$0xff] %v498_v0  ;;  %v502_v16 = vadd.f32 %v501_v15, %v177_v61  ;;  %v503_v17 = vpop.f32.mrb[11].mxu1 }
 0x1d5   :  { %535 = vst [vmem:[#allocation13 + $0x98] sm:$0xff] %v500_v14  ;;  %v504_v18 = vadd.f32 %v503_v17, %v181_v62  ;;  %v507_v19 = vpop.f32.mrb[12].mxu1 }
 0x1d6   :  { %538 = vst [vmem:[#allocation13 + $0xb0] sm:$0xff] %v502_v16  ;;  %v508_v20 = vadd.f32 %v507_v19, %v177_v61  ;;  %v509_v21 = vpop.f32.mrb[13].mxu1 }
 0x1d7   :  { %539 = vst [vmem:[#allocation13 + $0xb8] sm:$0xff] %v504_v18  ;;  %v510_v22 = vadd.f32 %v509_v21, %v181_v62  ;;  %v511_v23 = vpop.f32.mrb[14].mxu1 }
 0x1d8   :  { %542 = vst [vmem:[#allocation13 + $0xd0] sm:$0xff] %v508_v20  ;;  %v512_v24 = vadd.f32 %v511_v23, %v177_v61  ;;  %v513_v25 = vpop.f32.mrb[15].mxu1 }
 0x1d9   :  { %543 = vst [vmem:[#allocation13 + $0xd8] sm:$0xff] %v510_v22  ;;  %v514_v26 = vadd.f32 %v513_v25, %v181_v62 }
 0x1da   :  { %546 = vst [vmem:[#allocation13 + $0xf0] sm:$0xff] %v512_v24 }
 0x1db   :  { %547 = vst [vmem:[#allocation13 + $0xf8] sm:$0xff] %v514_v26 }
 0x1dc   :  { %1511 = shalt.err (!%p1508_p10)
}
 0x1dd   :  { %s1512_s29 = scalar_lea.hbm %s1830_s8, 4096 }
 0x1de   :  { %p1513_p11 = scmp.ne.s32.totalorder %s1830_s8, %s1512_s29  ;;  %p1516_p12 = scmp.lt.u32.totalorder %s1512_s29, %s1830_s8 }
 0x1e0   :  { %p1518_p13 = pnand %p1516_p12, %p1513_p11 }
 0x1e2   :  { %1521 = shalt.err (!%p1518_p13)
}
 0x1e3   :  { %s1570_s2 = smov 512   ;;  %s1571_s30 = smov 32  }
 0x1e4   :  { %1033 = dma.vmem_to_hbm [thread:$0]  %s1028_s27, 4096, %s1830_s8, [#allocation4], %s1570_s2, %s1570_s2, %s1571_s30  }
 0x1e5   :  { %s1572_s17 = smov [#allocation14]  }
 0x1e6   :  { %s1039_s18 = sshll.u32 %s1572_s17, 4  ;;  %s1040_s18 = int_to_ptr.vmem [resolvable:$true] %s1039_s18 }
 0x1e7   :  { %s1522_s8 = scalar_lea.vmem %s1040_s18, 1024  ;;  %p1527_p1 = scmp.lt.s32.totalorder %s1040_s18, %s1040_s18 }
 0x1e8   :  { %p1523_p0 = scmp.ne.s32.totalorder %s1040_s18, %s1522_s8  ;;  %p1528_p2 = scmp.lt.s32.totalorder %s1522_s8, %s1522_s8 }
 0x1ea   :  { %p1529_p3 = por %p1528_p2, %p1527_p1 }
 0x1ec   :  { %p1530_p4 = pnand %p1529_p3, %p1523_p0 }
 0x29c   :  { %v1229_v29 = vpop.f32.mrb[16].mxu1 }
 0x29d   :  { %1016 = vst [vmem:[#allocation14 + $0x10] sm:$0xff] %v1229_v29  ;;  %v983_v30 = vpop.f32.mrb[17].mxu1 }
 0x29e   :  { %1014 = vst [vmem:[#allocation14] sm:$0xff] %v983_v30  ;;  %v1230_v31 = vpop.f32.mrb[18].mxu1 }
 0x29f   :  { %1017 = vst [vmem:[#allocation14 + $0x18] sm:$0xff] %v1230_v31  ;;  %v986_v34 = vpop.f32.mrb[19].mxu1 }
 0x2a0   :  { %1015 = vst [vmem:[#allocation14 + $0x8] sm:$0xff] %v986_v34 }
 0x2a4   :  { %v1233_v37 = vpop.f32.mrb[20].mxu1 }
 0x2a5   :  { %1020 = vst [vmem:[#allocation14 + $0x30] sm:$0xff] %v1233_v37  ;;  %v999_v38 = vpop.f32.mrb[21].mxu1 }
 0x2a6   :  { %1018 = vst [vmem:[#allocation14 + $0x20] sm:$0xff] %v999_v38  ;;  %v1234_v39 = vpop.f32.mrb[22].mxu1 }
 0x2a7   :  { %1021 = vst [vmem:[#allocation14 + $0x38] sm:$0xff] %v1234_v39  ;;  %v1002_v42 = vpop.f32.mrb[23].mxu1 }
 0x2a8   :  { %1019 = vst [vmem:[#allocation14 + $0x28] sm:$0xff] %v1002_v42 }
 0x2a9   :  { %1533 = shalt.err (!%p1530_p4)
}
 0x2aa   :  { %s1534_s21 = scalar_lea.hbm %s1831_s9, 1024 }
 0x2ab   :  { %p1535_p5 = scmp.ne.s32.totalorder %s1831_s9, %s1534_s21  ;;  %p1538_p6 = scmp.lt.u32.totalorder %s1534_s21, %s1831_s9 }
 0x2ad   :  { %p1540_p7 = pnand %p1538_p6, %p1535_p5 }
 0x2af   :  { %1543 = shalt.err (!%p1540_p7)
}
 0x2b0   :  { %1045 = dma.vmem_to_hbm [thread:$0]  %s1040_s18, 1024, %s1831_s9, [#allocation15], %s1557_s19, %s1557_s19, %s1558_s20  }
 0x2b1   :  { %1552 = dma.done.wait [#allocation4], 4096  }
 0x2b2   :  { %1553 = vsyncadd [#allocation4], 4294963200 }
 0x2b3   :  { %1554 = dma.done.wait [#allocation15], 1024  }
 0x2b4   :  { %1555 = vsyncadd [#allocation15], 4294966272 }
 0x2b5   :  { %1052 = vsyncpa [#allocation3], 1 }
 0x2b6   :  { %1053 = vsyncpa [#allocation6], 1 }
 0x2b7   :  { %1054 = vsyncpa [#allocation9], 1 }
 0x2b8   :  { %1055 = vsyncpa [#allocation12], 1 }
 0x2b9   :  { %1056 = vsyncpa [#allocation4], 1 }
 0x2ba   :  { %1057 = vsyncpa [#allocation15], 1 }

</bundles_post_ra>
